<compile_context>
chip_gen: v5e
topology: v5e:2x2
jax: 0.10.0
libtpu: 0.0.40
codegen_flags: <defaults>
</compile_context>

<pallas_src>
import functools

import jax
import jax.numpy as jnp
from jax.experimental import pallas as pl
from jax.experimental.pallas import tpu as pltpu


def _round_up(x, m):
    return ((x + m - 1) // m) * m


def _cdiv(a, b):
    return -(-a // b)


def _vmem_capacity_bytes():
    """Physical VMEM per TensorCore; conservative fallback if query fails."""
    try:
        cap = getattr(pltpu.get_tpu_info(), "vmem_capacity_bytes", None)
        if cap:
            return int(cap)
    except Exception:
        pass
    return 64 * 1024 * 1024  # v7x has the smallest VMEM (64 MiB); safe everywhere


def _choose_tile_rows(bc_pad8, hw, in_itemsize, vmem_cap):
    """Heatmaps per grid step (multiple of 8 sublanes).

    Per-row VMEM cost: 2 double-buffered input rows + ~3 rows of f32/bf16
    temporaries (z, e, e_bf16).  The big buffers get at most ~half of physical
    VMEM; when the batch is large enough the grid is kept at >= ~8 steps so the
    software pipeline overlaps DMA with compute and v7x can split the parallel
    axis across its two TensorCores.
    """
    bytes_per_row = hw * (2 * in_itemsize + 3 * 4)
    budget = vmem_cap // 2
    budget_rows = max(8, (budget // bytes_per_row) // 8 * 8)
    target_steps = 8
    rows_for_steps = max(8, _round_up(_cdiv(bc_pad8, target_steps), 8))
    return int(max(8, min(budget_rows, rows_for_steps, 4096)))


def _soft_argmax_kernel(x_ref, w_ref, out_ref, *, beta):
    # x_ref:   (TB, hw)  TB flattened heatmaps (lane-dense)
    # w_ref:   (hw, 8)   bf16 resident weights:
    #                    col0 = x-coord - (w-1)/2, col1 = y-coord - (h-1)/2,
    #                    col2 = 1, cols 3..7 = 0
    # out_ref: (TB, 2)   centered [px, py]; offsets added back in the wrapper
    z = x_ref[...].astype(jnp.float32) * beta                # (TB, hw)
    m = jnp.max(z, axis=-1, keepdims=True)                   # stable softmax
    e = jnp.exp(z - m)                                       # (TB, hw) f32
    # One bf16 MXU matmul (f32 accumulation) does all three reductions:
    #   col 0 = sum(e * cx), col 1 = sum(e * cy), col 2 = sum(e) (denominator)
    moments = jnp.dot(e.astype(jnp.bfloat16), w_ref[...],
                      preferred_element_type=jnp.float32)    # (TB, 8) f32
    inv_denom = pl.reciprocal(moments[:, 2:3])               # exact (approx=False)
    out_ref[...] = (moments[:, 0:2] * inv_denom).astype(out_ref.dtype)


def soft_argmax_2d(x, beta=100.0):
    """x: (b, c, h, w) float array (f32 or bf16). Returns (b, c, 2) float32."""
    b, c, h, w = x.shape
    bc = b * c
    hw = h * w

    x_flat = x.reshape(bc, hw)
    in_itemsize = jnp.dtype(x.dtype).itemsize

    vmem_cap = _vmem_capacity_bytes()
    bc_pad8 = _round_up(bc, 8)                   # pad to sublanes FIRST
    tb = _choose_tile_rows(bc_pad8, hw, in_itemsize, vmem_cap)
    bc_final = _round_up(bc_pad8, tb)            # small residual padding only
    if bc_final != bc:
        # Zero padding: padded rows produce finite garbage that is sliced off.
        x_flat = jnp.pad(x_flat, ((0, bc_final - bc), (0, 0)))

    # Resident weight matrix (bf16): centered flattened WX / WY coordinates
    # (torch.meshgrid 'ij') plus a ones column for the softmax denominator.
    off_x = (w - 1) / 2.0
    off_y = (h - 1) / 2.0
    coord_x = jnp.tile(jnp.arange(w, dtype=jnp.float32), h) - off_x    # j - off_x
    coord_y = jnp.repeat(jnp.arange(h, dtype=jnp.float32), w) - off_y  # i - off_y
    ones = jnp.ones((hw, 1), jnp.float32)
    zeros = jnp.zeros((hw, 5), jnp.float32)
    wmat = jnp.concatenate(
        [coord_x[:, None], coord_y[:, None], ones, zeros], axis=1
    ).astype(jnp.bfloat16)                                             # (hw, 8)

    # Actual VMEM footprint: double-buffered input + f32/bf16 temporaries + W.
    vmem_bytes = (2 * tb * hw * in_itemsize      # input double buffer
                  + 3 * tb * hw * 4              # z, e (f32) + bf16 e temp
                  + 2 * hw * 8 * 2               # weight double buffer
                  + 2 * tb * 2 * 4               # output double buffer
                  + (4 << 20))                   # headroom / internal scratch
    vmem_limit = int(min(max(vmem_bytes, 32 * 1024 * 1024), vmem_cap))

    grid = (bc_final // tb,)

    out = pl.pallas_call(
        functools.partial(_soft_argmax_kernel, beta=float(beta)),
        out_shape=jax.ShapeDtypeStruct((bc_final, 2), jnp.float32),
        grid=grid,
        in_specs=[
            pl.BlockSpec((tb, hw), lambda i: (i, 0)),   # TB heatmaps per step
            pl.BlockSpec((hw, 8), lambda i: (0, 0)),    # tiny resident weights
        ],
        out_specs=pl.BlockSpec((tb, 2), lambda i: (i, 0)),
        compiler_params=pltpu.CompilerParams(
            dimension_semantics=("parallel",),          # shard across TCs on v7x
            vmem_limit_bytes=vmem_limit,
        ),
    )(x_flat, wmat)

    offsets = jnp.array([off_x, off_y], dtype=jnp.float32)
    return (out[:bc] + offsets).reshape(b, c, 2)


def _reference_soft_argmax_2d(x, beta=100.0):
    """Pure-JAX reference mirroring the PyTorch forward."""
    b, c, h, w = x.shape
    probs = jax.nn.softmax(x.reshape(b, c, -1).astype(jnp.float32) * beta, axis=-1)
    probs = probs.reshape(b, c, h, w)
    wx = jnp.broadcast_to(jnp.arange(w, dtype=jnp.float32)[None, :], (h, w))
    wy = jnp.broadcast_to(jnp.arange(h, dtype=jnp.float32)[:, None], (h, w))
    px = jnp.sum(probs * wx, axis=(2, 3))
    py = jnp.sum(probs * wy, axis=(2, 3))
    return jnp.stack((px, py), axis=-1)


if __name__ == "__main__":
    # Small shapes consistent with the module usage.
    b, c, h, w = 2, 4, 16, 16
    beta = 100.0

    key = jax.random.PRNGKey(0)
    x = jax.random.normal(key, (b, c, h, w), dtype=jnp.float32)

    preds = soft_argmax_2d(x, beta=beta)
    preds = jax.block_until_ready(preds)

    ref = _reference_soft_argmax_2d(x, beta=beta)
    assert preds.shape == (b, c, 2)
    assert jnp.allclose(preds, ref, atol=2e-3, rtol=2e-3), (
        f"mismatch: max abs err {jnp.max(jnp.abs(preds - ref))}")

    print("KERNEL_OK")
</pallas_src>

<mosaic_0001>
module attributes {stable_mosaic.version = 11 : i64} {
  func.func @_soft_argmax_kernel(%arg0: i32, %arg1: memref<8x256xf32, #tpu.memory_space<vmem>>, %arg2: memref<256x8xbf16, #tpu.memory_space<vmem>>, %arg3: memref<8x2xf32, #tpu.memory_space<vmem>>) attributes {dimension_semantics = [#tpu.dimension_semantics<parallel>], iteration_bounds = array<i64: 1>, scalar_prefetch = 0 : i64, scratch_operands = 0 : i64, tpu.core_type = #tpu.core_type<tc>, window_params = [{transform_indices = @transform_0, window_bounds = array<i64: 8, 256>}, {pipeline_mode = #tpu.pipeline_mode<synchronous>, transform_indices = @transform_1, window_bounds = array<i64: 256, 8>}, {transform_indices = @transform_2, window_bounds = array<i64: 8, 2>}]} {
    %c0 = arith.constant 0 : index
    %c0_0 = arith.constant 0 : index
    %0 = vector.load %arg1[%c0, %c0_0] : memref<8x256xf32, #tpu.memory_space<vmem>>, vector<8x256xf32>
    %cst = arith.constant 1.000000e+02 : f32
    %1 = vector.broadcast %cst : f32 to vector<8x256xf32>
    %2 = arith.mulf %0, %1 : vector<8x256xf32>
    %cst_1 = arith.constant dense<0xFF800000> : vector<8xf32>
    %3 = vector.multi_reduction <maximumf>, %2, %cst_1 [1] : vector<8x256xf32> to vector<8xf32>
    %4 = vector.shape_cast %3 : vector<8xf32> to vector<8x1xf32>
    %5 = vector.broadcast %4 : vector<8x1xf32> to vector<8x256xf32>
    %6 = arith.subf %2, %5 : vector<8x256xf32>
    %7 = math.exp %6 : vector<8x256xf32>
    %8 = arith.truncf %7 : vector<8x256xf32> to vector<8x256xbf16>
    %c0_2 = arith.constant 0 : index
    %c0_3 = arith.constant 0 : index
    %9 = vector.load %arg2[%c0_2, %c0_3] : memref<256x8xbf16, #tpu.memory_space<vmem>>, vector<256x8xbf16>
    %cst_4 = arith.constant dense<0.000000e+00> : vector<8x8xf32>
    %10 = tpu.matmul %8, %9, %cst_4 {dimension_numbers = #tpu.dot_dimension_numbers<[1], [0], [0], [1], [0, 0, 1, 1], [], []>} : vector<8x256xbf16>, vector<256x8xbf16>, vector<8x8xf32> -> vector<8x8xf32>
    %11 = vector.extract_strided_slice %10 {offsets = [0, 2], sizes = [8, 1], strides = [1, 1]} : vector<8x8xf32> to vector<8x1xf32>
    %12 = tpu.reciprocal %11 : vector<8x1xf32> -> vector<8x1xf32>
    %13 = vector.extract_strided_slice %10 {offsets = [0, 0], sizes = [8, 2], strides = [1, 1]} : vector<8x8xf32> to vector<8x2xf32>
    %14 = vector.broadcast %12 : vector<8x1xf32> to vector<8x2xf32>
    %15 = arith.mulf %13, %14 : vector<8x2xf32>
    %c0_5 = arith.constant 0 : index
    %c0_6 = arith.constant 0 : index
    %16 = vector.load %arg3[%c0_5, %c0_6] : memref<8x2xf32, #tpu.memory_space<vmem>>, vector<8x2xf32>
    tpu.vector_store %arg3[%c0_5, %c0_6], %15 {strides = array<i32>} : memref<8x2xf32, #tpu.memory_space<vmem>>, vector<8x2xf32>,
    return
  }
  func.func @transform_0(%arg0: i32) -> (i32, i32) {
    %c0_i32 = arith.constant 0 : i32
    %c0_i32_0 = arith.constant 0 : i32
    return %arg0, %c0_i32 : i32, i32
  }
  func.func @transform_1(%arg0: i32) -> (i32, i32) {
    %c0_i32 = arith.constant 0 : i32
    %c0_i32_0 = arith.constant 0 : i32
    %c0_i32_1 = arith.constant 0 : i32
    return %c0_i32, %c0_i32_0 : i32, i32
  }
  func.func @transform_2(%arg0: i32) -> (i32, i32) {
    %c0_i32 = arith.constant 0 : i32
    %c0_i32_0 = arith.constant 0 : i32
    return %arg0, %c0_i32 : i32, i32
  }
}

</mosaic_0001>

<bundles_post_ra>
// kernel: tpu_custom_call.1
= control target key start
LH: loop header
LB: loop body
LE: loop exit
PB: predicated region body
PF: predicated region fallthrough
CT: control target
= control target key end

     0   :  { %v294_v30 = vmov 2   ;;  %vm200_vm4 = vcmask 15360   ;;  %s367_s0 = inlined_call_operand.vmem [shape: f32[8,256], index: 0, kind: input, shape index: {}]   ;;  %s368_s1 = inlined_call_operand.vmem [shape: bf16[256,8], index: 1, kind: input, shape index: {}]   ;;  %s369_s2 = inlined_call_operand.vmem [shape: f32[8,2], index: 2, kind: output, shape index: {}]  }
   0x1   :  { %v11_v0 = vld [vmem:[%s367_s0] sm:$0xff]  ;;  %v12_v1 = vld [vmem:[%s367_s0 + $0x8] sm:$0xff]  ;;  %v277_v2 = vld [vmem:[%s368_s1 + $0x38] sm:$0xff]  ;;  %287 = vset.pattern.permute.xlu0 %v294_v30 }
   0x2   :  { %v13_v3 = vmul.f32 100.0, %v11_v0  ;;  %v14_v4 = vmul.f32 100.0, %v12_v1  ;;  %v285_v5 = vld [vmem:[%s368_s1 + $0x78] sm:$0xff]  ;;  %154 = vmatpush.bf16.msra.mxu0 %v277_v2  ;;  %v276_v6 = vld [vmem:[%s368_s1 + $0x30] sm:$0xff]  ;;  %v275_v9 = vld [vmem:[%s368_s1 + $0x28] sm:$0xff] }
   0x3   :  { %167 = vmatpush.bf16.msra.mxu1 %v285_v5  ;;  %v284_v8 = vld [vmem:[%s368_s1 + $0x70] sm:$0xff]  ;;  %v283_v10 = vld [vmem:[%s368_s1 + $0x68] sm:$0xff]  ;;  %v274_v11 = vld [vmem:[%s368_s1 + $0x20] sm:$0xff] }
   0x4   :  { %v15_v7 = vmax.f32 %v13_v3, %v14_v4  ;;  %v282_v12 = vld [vmem:[%s368_s1 + $0x60] sm:$0xff]  ;;  %v273_v13 = vld [vmem:[%s368_s1 + $0x18] sm:$0xff]  ;;  %v272_v15 = vld [vmem:[%s368_s1 + $0x10] sm:$0xff] }
   0x5   :  { %v281_v14 = vld [vmem:[%s368_s1 + $0x58] sm:$0xff]  ;;  %v280_v16 = vld [vmem:[%s368_s1 + $0x50] sm:$0xff]  ;;  %v271_v17 = vld [vmem:[%s368_s1 + $0x8] sm:$0xff] }
   0x6   :  { %16 = vmax.xlane.f32.xlu0 %v15_v7  ;;  %155 = vmatpush.bf16.msra.mxu0 %v276_v6  ;;  %v279_v18 = vld [vmem:[%s368_s1 + $0x48] sm:$0xff]  ;;  %v270_v19 = vld [vmem:[%s368_s1] sm:$0xff] }
   0x7   :  { %168 = vmatpush.bf16.msra.mxu1 %v284_v8  ;;  %v278_v20 = vld [vmem:[%s368_s1 + $0x40] sm:$0xff] }
   0xa   :  { %156 = vmatpush.bf16.msra.mxu0 %v275_v9 }
   0xb   :  { %169 = vmatpush.bf16.msra.mxu1 %v283_v10 }
   0xe   :  { %157 = vmatpush.bf16.msra.mxu0 %v274_v11 }
   0xf   :  { %170 = vmatpush.bf16.msra.mxu1 %v282_v12 }
  0x12   :  { %158 = vmatpush.bf16.msra.mxu0 %v273_v13 }
  0x13   :  { %171 = vmatpush.bf16.msra.mxu1 %v281_v14 }
  0x16   :  { %159 = vmatpush.bf16.msra.mxu0 %v272_v15 }
  0x17   :  { %172 = vmatpush.bf16.msra.mxu1 %v280_v16 }
  0x1a   :  { %160 = vmatpush.bf16.msra.mxu0 %v271_v17 }
  0x1b   :  { %173 = vmatpush.bf16.msra.mxu1 %v279_v18 }
  0x1e   :  { %161 = vmatpush.bf16.msra.mxu0 %v270_v19 }
  0x1f   :  { %174 = vmatpush.bf16.msra.mxu1 %v278_v20 }
  0x79   :  { %v17_v21 = vpop.xlane.xlu0 %16 }
  0x7a   :  { %v18_v22 = vsub.f32 %v13_v3, %v17_v21  ;;  %v19_v23 = vsub.f32 %v14_v4, %v17_v21 }
  0x7c   :  { %v20_v24 = vmul.f32 1.442695, %v18_v22  ;;  %v22_v25 = vmul.f32 1.442695, %v19_v23 }
  0x7e   :  { %288 = vpow2.f32 %v20_v24 }
  0x7f   :  { %290 = vpow2.f32 %v22_v25 }
  0x84   :  { %v289_v26 = vpop.eup %288 }
  0x85   :  { %v291_v27 = vpop.eup %290  ;;  %v24_v28 = vpack.c.bf16 %v289_v26, %v289_v26 }
  0x86   :  { %v25_v29 = vpack.c.bf16 %v291_v27, %v291_v27 }
  0x87   :  { %162 = vmatmul.bf16.vlgmr.msra.gmra.mxu0 %v24_v28 }
  0x88   :  { %175 = vmatmul.bf16.vlgmr.msra.gmra.mxu1 %v25_v29 }
 0x104   :  { %v163_v31 = vpop.f32.mrf.mxu0 }
 0x105   :  { %v176_v32 = vpop.f32.mrf.mxu1 }
 0x106   :  { %v177_v33 = vadd.f32 %v176_v32, %v163_v31 }
 0x108   :  { %292 = vrcp.f32 %v177_v33  ;;  %v191_v39 = vand.u32 2147483648, %v177_v33  ;;  %v189_v41 = vand.u32 2147483647, %v177_v33  ;;  %vm185_vm1 = vweird.f32 %v177_v33 }
 0x10a   :  { %v192_v43 = vor.u32 1.1754944e-38, %v191_v39  ;;  %vm190_vm3 = vcmp.eq.f32.partialorder %v189_v41, 8.507059e+37 }
 0x10c   :  { %v165_v34 = vpop.f32.mrf.mxu0 }
 0x10d   :  { %v178_v35 = vpop.f32.mrf.mxu1 }
 0x10e   :  { %v293_v36 = vpop.eup %292 }
 0x10f   :  { %v181_v37 = vmul.f32 %v293_v36, %v177_v33  ;;  %vm186_vm0 = vweird.f32 %v293_v36 }
 0x110   :  { %vm187_vm2 = vmor %vm185_vm1, %vm186_vm0 }
 0x111   :  { %v182_v38 = vsub.f32 1.0, %v181_v37 }
 0x113   :  { %v183_v40 = vmul.f32 %v293_v36, %v182_v38 }
 0x115   :  { %v184_v42 = vadd.f32 %v293_v36, %v183_v40 }
 0x117   :  { %v188_v44 = vsel %vm187_vm2, %v293_v36, %v184_v42 }
 0x118   :  { %v193_v45 = vsel %vm190_vm3, %v192_v43, %v188_v44 }
 0x119   :  { %196 = vperm.xlu0 %287, %v193_v45  }
 0x18b   :  { %v197_v46 = vpop.permute.xlu0 %196 }
 0x18c   :  { %v199_v47 = vmul.f32 %v197_v46, %v177_v33 }
 0x18e   :  { %201 = vst.msk [vmem:[%s369_s2] sm:$0xff] %vm200_vm4, %v199_v47 }

</bundles_post_ra>
